<compile_context>
chip_gen: v6e
topology: v6e:2x2x1
jax: 0.10.0
libtpu: 0.0.40
codegen_flags: <defaults>
</compile_context>

<pallas_src>
import functools

import jax
import jax.numpy as jnp
import numpy as np
from jax import lax
from jax.experimental import pallas as pl
from jax.experimental.pallas import tpu as pltpu


def _rot_trans_kernel(params_ref, base_ref, img_ref, out_ref, *, C, H, W):
    """One grid step = one batch element.

    params_ref : (B, 6) f32 in SMEM   [axx, axy, bx, ayx, ayy, by]
    base_ref   : (2, HW) f32 in VMEM  row 0 = x base coords, row 1 = y base
    img_ref    : (C, H, W)  block for batch element b
    out_ref    : (C, H*W)   block for batch element b (lane-dense)
    """
    HW = H * W
    b = pl.program_id(0)

    # --- per-batch pre-folded affine->input-pixel coefficients (SMEM scalars) -
    axx = params_ref[b, 0]
    axy = params_ref[b, 1]
    bx = params_ref[b, 2]
    ayx = params_ref[b, 3]
    ayy = params_ref[b, 4]
    by = params_ref[b, 5]

    # --- batch-invariant base grid coords (resident; constant index_map) -----
    xb = base_ref[0:1, :]                               # (1, HW)
    yb = base_ref[1:2, :]                               # (1, HW)

    # input-pixel sampling coordinates (affine_grid + unnormalize, pre-folded)
    ix = axx * xb + axy * yb + bx                       # (1, HW)
    iy = ayx * xb + ayy * yb + by                       # (1, HW)

    # --- separable bilinear "tent" weights (zeros padding falls out) ---------
    q = lax.broadcasted_iota(jnp.int32, (W, HW), 0).astype(jnp.float32)
    p = lax.broadcasted_iota(jnp.int32, (H, HW), 0).astype(jnp.float32)
    w_x = jnp.maximum(1.0 - jnp.abs(q - ix), 0.0)       # (W, HW)
    w_y = jnp.maximum(1.0 - jnp.abs(p - iy), 0.0)       # (H, HW)

    # --- stage 1: x-mixing on the MXU ----------------------------------------
    img2d = img_ref[...].astype(jnp.float32).reshape(C * H, W)          # (C*H, W)
    tmp = jnp.dot(img2d, w_x, preferred_element_type=jnp.float32)       # (C*H, HW)

    # --- stage 2: y-mixing (VPU mul + sublane reduce), single store ----------
    # TODO(synk): for very large H*W, tile the output-pixel axis with a second
    # (parallel) grid dimension; unnecessary at these sizes.
    tmp3 = tmp.reshape(C, H, HW)                        # layout-preserving split
    out = jnp.sum(tmp3 * w_y[None, :, :], axis=1)       # (C, HW)
    out_ref[...] = out.astype(out_ref.dtype)


def rotation_translation_forward(imgs, xform_params):
    """imgs: (B, C, H, W) f32 NCHW; xform_params: (B, 3) f32 [angle, tx, ty]."""
    B, C, H, W = imgs.shape
    HW = H * W
    f32 = jnp.float32

    # Fold affine_grid + grid_sample unnormalization into 6 scalars per batch:
    #   ix = (W/2)*cos*xb - (W/2)*sin*yb + (W/2)*tx + (W-1)/2
    #   iy = (H/2)*sin*xb + (H/2)*cos*yb + (H/2)*ty + (H-1)/2
    ang = xform_params[:, 0].astype(f32)
    cos_a = jnp.cos(ang)
    sin_a = jnp.sin(ang)
    tx = xform_params[:, 1].astype(f32)
    ty = xform_params[:, 2].astype(f32)
    hw_, hh_ = W / 2.0, H / 2.0
    scalar_params = jnp.stack(
        [hw_ * cos_a, -hw_ * sin_a, hw_ * tx + (W - 1) / 2.0,
         hh_ * sin_a, hh_ * cos_a, hh_ * ty + (H - 1) / 2.0],
        axis=1).astype(f32)                             # (B, 6)

    # batch-invariant base grid coordinates, flattened (x fastest)
    jx = jnp.arange(W, dtype=f32)
    iy = jnp.arange(H, dtype=f32)
    xb = (2.0 * jx + 1.0) / W - 1.0                     # (W,)
    yb = (2.0 * iy + 1.0) / H - 1.0                     # (H,)
    base = jnp.stack([jnp.tile(xb, H), jnp.repeat(yb, W)], axis=0)   # (2, HW)

    out_flat = pl.pallas_call(
        functools.partial(_rot_trans_kernel, C=C, H=H, W=W),
        out_shape=jax.ShapeDtypeStruct((B, C, HW), imgs.dtype),
        grid=(B,),
        in_specs=[
            # tiny per-batch scalars -> SMEM, read with the scalar unit
            pl.BlockSpec(memory_space=pltpu.MemorySpace.SMEM),
            # batch-invariant coordinates, constant index_map (resident)
            pl.BlockSpec((2, HW), lambda b: (0, 0)),
            # per-batch (C, H, W) image block
            pl.BlockSpec((None, C, H, W), lambda b: (b, 0, 0, 0)),
        ],
        # lane-dense output block (last dim = HW, multiple of 128)
        out_specs=pl.BlockSpec((None, C, HW), lambda b: (b, 0, 0)),
        compiler_params=pltpu.CompilerParams(
            dimension_semantics=("parallel",)),
    )(scalar_params, base, imgs)
    return out_flat.reshape(B, C, H, W)


def reference_forward(imgs, params):
    """Pure-JAX reference (gather-based bilinear grid_sample)."""
    B, C, H, W = imgs.shape
    f32 = jnp.float32
    ang = params[:, 0][:, None, None]
    tx = params[:, 1][:, None, None]
    ty = params[:, 2][:, None, None]
    cos = jnp.cos(ang)
    sin = jnp.sin(ang)
    xb = ((2.0 * jnp.arange(W, dtype=f32) + 1.0) / W - 1.0)[None, None, :]
    yb = ((2.0 * jnp.arange(H, dtype=f32) + 1.0) / H - 1.0)[None, :, None]
    gx = cos * xb - sin * yb + tx
    gy = sin * xb + cos * yb + ty
    ix = ((gx + 1.0) * W - 1.0) * 0.5
    iy = ((gy + 1.0) * H - 1.0) * 0.5
    x0 = jnp.floor(ix)
    y0 = jnp.floor(iy)
    wx1 = ix - x0
    wx0 = 1.0 - wx1
    wy1 = iy - y0
    wy0 = 1.0 - wy1
    x0i = x0.astype(jnp.int32)
    y0i = y0.astype(jnp.int32)
    x1i = x0i + 1
    y1i = y0i + 1
    flat = imgs.reshape(B, C, H * W)

    def gather(yc, xc):
        valid = ((xc >= 0) & (xc < W) & (yc >= 0) & (yc < H)).astype(imgs.dtype)
        idx = jnp.clip(yc, 0, H - 1) * W + jnp.clip(xc, 0, W - 1)      # (B,H,W)
        idxf = idx.reshape(B, 1, H * W)
        vals = jnp.take_along_axis(
            flat, jnp.broadcast_to(idxf, (B, C, H * W)), axis=2)
        return vals.reshape(B, C, H, W) * valid[:, None]

    return (gather(y0i, x0i) * (wy0 * wx0)[:, None]
            + gather(y0i, x1i) * (wy0 * wx1)[:, None]
            + gather(y1i, x0i) * (wy1 * wx0)[:, None]
            + gather(y1i, x1i) * (wy1 * wx1)[:, None])


if __name__ == "__main__":
    B, C, H, W = 2, 4, 16, 16
    key = jax.random.PRNGKey(0)
    k_img, k_ang, k_shift = jax.random.split(key, 3)

    imgs = jax.random.uniform(k_img, (B, C, H, W), dtype=jnp.float32)

    # Deterministic "random_init=True" parameter initialization
    # (angle in rot_bounds, translations in shift_bounds).
    rot_lo, rot_hi = -np.pi / 2.5, np.pi / 2.5
    sh_lo, sh_hi = -0.3, 0.3
    angles = jax.random.uniform(k_ang, (B, 1), jnp.float32, rot_lo, rot_hi)
    shifts = jax.random.uniform(k_shift, (B, 2), jnp.float32, sh_lo, sh_hi)
    xform_params = jnp.concatenate([angles, shifts], axis=1)   # (B, 3)

    out = rotation_translation_forward(imgs, xform_params)
    out = jax.block_until_ready(out)

    ref = reference_forward(imgs, xform_params)
    np.testing.assert_allclose(np.asarray(out), np.asarray(ref),
                               rtol=1e-4, atol=1e-4)
    assert out.shape == (B, C, H, W) and out.dtype == imgs.dtype

    print("KERNEL_OK")
</pallas_src>

<mosaic_0001>
module attributes {stable_mosaic.version = 11 : i64} {
  func.func @_rot_trans_kernel(%arg0: i32, %arg1: memref<2x6xf32, #tpu.memory_space<smem>>, %arg2: memref<2x256xf32, #tpu.memory_space<vmem>>, %arg3: memref<1x4x16x16xf32, #tpu.memory_space<vmem>>, %arg4: memref<1x4x256xf32, #tpu.memory_space<vmem>>) attributes {dimension_semantics = [#tpu.dimension_semantics<parallel>], iteration_bounds = array<i64: 2>, scalar_prefetch = 0 : i64, scratch_operands = 0 : i64, tpu.core_type = #tpu.core_type<tc>, window_params = [{transform_indices = @transform_0, window_bounds = array<i64: 2, 6>}, {pipeline_mode = #tpu.pipeline_mode<synchronous>, transform_indices = @transform_1, window_bounds = array<i64: 2, 256>}, {transform_indices = @transform_2, window_bounds = array<i64: 1, 4, 16, 16>}, {transform_indices = @transform_3, window_bounds = array<i64: 1, 4, 256>}]} {
    %0 = arith.index_cast %arg0 : i32 to index
    %c0 = arith.constant 0 : index
    %1 = memref.load %arg1[%0, %c0] : memref<2x6xf32, #tpu.memory_space<smem>>
    %2 = arith.index_cast %arg0 : i32 to index
    %c1 = arith.constant 1 : index
    %3 = memref.load %arg1[%2, %c1] : memref<2x6xf32, #tpu.memory_space<smem>>
    %4 = arith.index_cast %arg0 : i32 to index
    %c2 = arith.constant 2 : index
    %5 = memref.load %arg1[%4, %c2] : memref<2x6xf32, #tpu.memory_space<smem>>
    %6 = arith.index_cast %arg0 : i32 to index
    %c3 = arith.constant 3 : index
    %7 = memref.load %arg1[%6, %c3] : memref<2x6xf32, #tpu.memory_space<smem>>
    %8 = arith.index_cast %arg0 : i32 to index
    %c4 = arith.constant 4 : index
    %9 = memref.load %arg1[%8, %c4] : memref<2x6xf32, #tpu.memory_space<smem>>
    %10 = arith.index_cast %arg0 : i32 to index
    %c5 = arith.constant 5 : index
    %11 = memref.load %arg1[%10, %c5] : memref<2x6xf32, #tpu.memory_space<smem>>
    %c0_0 = arith.constant 0 : index
    %c0_1 = arith.constant 0 : index
    %12 = vector.load %arg2[%c0_0, %c0_1] : memref<2x256xf32, #tpu.memory_space<vmem>>, vector<1x256xf32>
    %c1_2 = arith.constant 1 : index
    %c0_3 = arith.constant 0 : index
    %13 = vector.load %arg2[%c1_2, %c0_3] : memref<2x256xf32, #tpu.memory_space<vmem>>, vector<1x256xf32>
    %14 = vector.broadcast %1 : f32 to vector<1x256xf32>
    %15 = arith.mulf %14, %12 : vector<1x256xf32>
    %16 = vector.broadcast %3 : f32 to vector<1x256xf32>
    %17 = arith.mulf %16, %13 : vector<1x256xf32>
    %18 = arith.addf %15, %17 : vector<1x256xf32>
    %19 = vector.broadcast %5 : f32 to vector<1x256xf32>
    %20 = arith.addf %18, %19 : vector<1x256xf32>
    %21 = vector.broadcast %7 : f32 to vector<1x256xf32>
    %22 = arith.mulf %21, %12 : vector<1x256xf32>
    %23 = vector.broadcast %9 : f32 to vector<1x256xf32>
    %24 = arith.mulf %23, %13 : vector<1x256xf32>
    %25 = arith.addf %22, %24 : vector<1x256xf32>
    %26 = vector.broadcast %11 : f32 to vector<1x256xf32>
    %27 = arith.addf %25, %26 : vector<1x256xf32>
    %28 = tpu.iota {dimensions = array<i32: 0>} : vector<16x256xi32>
    %29 = arith.sitofp %28 : vector<16x256xi32> to vector<16x256xf32>
    %30 = tpu.iota {dimensions = array<i32: 0>} : vector<16x256xi32>
    %31 = arith.sitofp %30 : vector<16x256xi32> to vector<16x256xf32>
    %32 = vector.broadcast %20 : vector<1x256xf32> to vector<16x256xf32>
    %33 = arith.subf %29, %32 : vector<16x256xf32>
    %34 = math.absf %33 : vector<16x256xf32>
    %cst = arith.constant 1.000000e+00 : f32
    %35 = vector.broadcast %cst : f32 to vector<16x256xf32>
    %36 = arith.subf %35, %34 : vector<16x256xf32>
    %cst_4 = arith.constant 0.000000e+00 : f32
    %37 = vector.broadcast %cst_4 : f32 to vector<16x256xf32>
    %38 = arith.maximumf %36, %37 : vector<16x256xf32>
    %39 = vector.broadcast %27 : vector<1x256xf32> to vector<16x256xf32>
    %40 = arith.subf %31, %39 : vector<16x256xf32>
    %41 = math.absf %40 : vector<16x256xf32>
    %cst_5 = arith.constant 1.000000e+00 : f32
    %42 = vector.broadcast %cst_5 : f32 to vector<16x256xf32>
    %43 = arith.subf %42, %41 : vector<16x256xf32>
    %cst_6 = arith.constant 0.000000e+00 : f32
    %44 = vector.broadcast %cst_6 : f32 to vector<16x256xf32>
    %45 = arith.maximumf %43, %44 : vector<16x256xf32>
    %c0_7 = arith.constant 0 : index
    %c0_8 = arith.constant 0 : index
    %c0_9 = arith.constant 0 : index
    %c0_10 = arith.constant 0 : index
    %46 = vector.load %arg3[%c0_7, %c0_8, %c0_9, %c0_10] : memref<1x4x16x16xf32, #tpu.memory_space<vmem>>, vector<1x4x16x16xf32>
    %47 = vector.shape_cast %46 : vector<1x4x16x16xf32> to vector<4x16x16xf32>
    %48 = vector.shape_cast %47 : vector<4x16x16xf32> to vector<64x16xf32>
    %cst_11 = arith.constant dense<0.000000e+00> : vector<64x256xf32>
    %49 = tpu.matmul %48, %38, %cst_11 {dimension_numbers = #tpu.dot_dimension_numbers<[1], [0], [0], [1], [0, 0, 1, 1], [], []>} : vector<64x16xf32>, vector<16x256xf32>, vector<64x256xf32> -> vector<64x256xf32>
    %50 = vector.shape_cast %49 : vector<64x256xf32> to vector<4x16x256xf32>
    %51 = vector.shape_cast %45 : vector<16x256xf32> to vector<1x16x256xf32>
    %52 = vector.broadcast %51 : vector<1x16x256xf32> to vector<4x16x256xf32>
    %53 = arith.mulf %50, %52 : vector<4x16x256xf32>
    %cst_12 = arith.constant dense<0.000000e+00> : vector<4x256xf32>
    %54 = vector.multi_reduction <add>, %53, %cst_12 [1] : vector<4x16x256xf32> to vector<4x256xf32>
    %c0_13 = arith.constant 0 : index
    %c0_14 = arith.constant 0 : index
    %c0_15 = arith.constant 0 : index
    %55 = vector.load %arg4[%c0_13, %c0_14, %c0_15] : memref<1x4x256xf32, #tpu.memory_space<vmem>>, vector<1x4x256xf32>
    %56 = vector.shape_cast %55 : vector<1x4x256xf32> to vector<4x256xf32>
    %57 = vector.shape_cast %54 : vector<4x256xf32> to vector<1x4x256xf32>
    tpu.vector_store %arg4[%c0_13, %c0_14, %c0_15], %57 {strides = array<i32>} : memref<1x4x256xf32, #tpu.memory_space<vmem>>, vector<1x4x256xf32>,
    return
  }
  func.func @transform_0(%arg0: i32) -> (i32, i32) {
    %c0_i32 = arith.constant 0 : i32
    %c0_i32_0 = arith.constant 0 : i32
    %c0_i32_1 = arith.constant 0 : i32
    return %c0_i32, %c0_i32_0 : i32, i32
  }
  func.func @transform_1(%arg0: i32) -> (i32, i32) {
    %c0_i32 = arith.constant 0 : i32
    %c0_i32_0 = arith.constant 0 : i32
    %c0_i32_1 = arith.constant 0 : i32
    return %c0_i32, %c0_i32_0 : i32, i32
  }
  func.func @transform_2(%arg0: i32) -> (i32, i32, i32, i32) {
    %c0_i32 = arith.constant 0 : i32
    %c0_i32_0 = arith.constant 0 : i32
    %c0_i32_1 = arith.constant 0 : i32
    %c0_i32_2 = arith.constant 0 : i32
    return %arg0, %c0_i32, %c0_i32_0, %c0_i32_1 : i32, i32, i32, i32
  }
  func.func @transform_3(%arg0: i32) -> (i32, i32, i32) {
    %c0_i32 = arith.constant 0 : i32
    %c0_i32_0 = arith.constant 0 : i32
    %c0_i32_1 = arith.constant 0 : i32
    return %arg0, %c0_i32, %c0_i32_0 : i32, i32, i32
  }
}

</mosaic_0001>

<bundles_post_ra>
// kernel: tpu_custom_call.1
= control target key start
LH: loop header
LB: loop body
LE: loop exit
PB: predicated region body
PF: predicated region fallthrough
CT: control target
= control target key end

     0   :  { %8 = vsyncpa [#allocation5], 0  ;;  %s1145_s0 = inlined_call_operand.hbm [shape: f32[2,6], index: 0, kind: input, shape index: {}]   ;;  %s1146_s1 = inlined_call_operand.hbm [shape: f32[2,256], index: 1, kind: input, shape index: {}]   ;;  %s1147_s2 = inlined_call_operand.hbm [shape: f32[2,4,16,16], index: 2, kind: input, shape index: {}]   ;;  %s1148_s3 = inlined_call_operand.hbm [shape: f32[2,4,256], index: 3, kind: output, shape index: {}]  }
   0x1   :  { %9 = vsyncpa [#allocation3], 0 }
   0x2   :  { %10 = vsyncpa [#allocation8], 0 }
   0x3   :  { %12 = vsyncpa [#allocation8 + $0x1], 0 }
   0x4   :  { %13 = vsyncpa [#allocation4], 0 }
   0x5   :  { %15 = vsyncpa [#allocation4 + $0x1], 0  ;;  %s927_s12 = smov 0   ;;  %s929_s13 = smov 0  }
   0x6   :  { %s931_s14 = smov 0   ;;  %s933_s15 = smov 0  }
   0x7 LB: > { %s948_s16 = sadd.s32 4294967295, %s898_s15   ;;  %s658_s17 = sadd.s32 4294967294, %s898_s15   ;;  %s898_s15 = sphi %s933_s15, %s1174_s15   ;;  %s894_s14 = sphi %s931_s14, %s1173_s14   ;;  %s890_s13 = sphi %s929_s13, %s1172_s13   ;;  %s886_s12 = sphi %s927_s12, %s1171_s12  }
   0x8   : > { %s952_s18 = sadd.s32 1, %s898_s15   ;;  %s70_s19 = sadd.s32 1, %s894_s14 }
   0x9   : > { %s67_s20 = ssub.s32 %s898_s15, %s952_s18  ;;  %p77_p0 = scmp.ne.s32.totalorder %s894_s14, %s890_s13 }
   0xa   : > { %p68_p1 = scmp.eq.s32.totalorder %s67_s20, 0  ;;  %p78_p2 = scmp.eq.s32.totalorder %s898_s15, 0 }
   0xb   : > { %p83_p3 = scmp.ne.s32.totalorder %s890_s13, %s886_s12  ;;  %p1149_p4 = scmp.eq.s32.totalorder %s948_s16, 0 }
   0xc   : > { %s964_s21 = scalar_select %p68_p1, %s894_s14, %s70_s19  }
   0xd   : > { %p966_p5 = por %p78_p2, %p77_p0  ;;  %p972_p6 = por %p1149_p4, %p83_p3 }
   0xe   : > { %p107_p7 = scmp.eq.s32.totalorder %s948_s16, 1  ;;  %p113_p8 = scmp.eq.s32.totalorder %s658_s17, 1 }
   0xf   : > { %s1153_s22 = scalar_select %p966_p5, 1, 0 }
  0x10   : > { %s1154_s23 = scalar_select %p972_p6, 1, 0 }
  0x11   : > { %p659_p9 = scmp.ge.s32.totalorder %s898_s15, 1  ;;  %p120_p10 = scmp.lt.s32.totalorder %s898_s15, 3 }
  0x12   : > { %p979_p11 = por %p107_p7, %p77_p0  ;;  %p983_p12 = por %p113_p8, %p83_p3 }
  0x13   : > { %p987_p13 = pnand %p659_p9, %p120_p10  ;;  %p720_p4 = scmp.lt.s32.totalorder %s898_s15, 2 }
  0x14   : > { %s1155_s24 = scalar_select %p979_p11, 1, 0 }
  0x15   : > { %s1156_s25 = scalar_select %p983_p12, 1, 0 }
  0x16   : > { %s1157_s26 = scalar_select %p987_p13, 1, 0 }
  0x17   : > { %p703_p2 = pneg %p987_p13  ;;  %s153_s27 = sand.u32 1, %s894_s14  }
  0x18   : > { %p1158_p6 = scmp.eq.s32.totalorder %s948_s16, 0  ;;  %p1160_p0 = scmp.ne.s32.totalorder %s1153_s22, 0 }
  0x19   : > { %s900_s30 = smov [#allocation6]   ;;  %s901_s5 = smov [#allocation2]  }
  0x1a   : > { %p998_p5 = pnand %p703_p2, %p1158_p6  ;;  %p1004_p3 = pnand %p720_p4, %p1160_p0 }
  0x1b   : > { %s142_s4 = sshll.u32 %s900_s30, 4  ;;  %s663_s8 = sshll.u32 %s153_s27, 6  ;;  %s143_s4 = int_to_ptr.vmem [resolvable:$true] %s142_s4 }
  0x1c   : > { %706 = dma.hbm_to_smem (!%p998_p5), %s1145_s0, 32, %s901_s5, [#allocation5]  }
  0x1d   : > { %p774_p6 = pneg %p998_p5  ;;  %s783_s9 = scalar_lea.vmem %s143_s4, 64 }
  0x1e   : > { %p784_p7 = scmp.ne.s32.totalorder %s143_s4, %s783_s9  ;;  %p791_p4 = scmp.lt.s32.totalorder %s143_s4, %s143_s4 }
  0x1f   : > { %p792_p10 = scmp.lt.s32.totalorder %s783_s9, %s783_s9 }
  0x20   : > { %p786_p8 = pnand %p784_p7, %p774_p6 }
  0x21   : > { %p793_p2 = por %p792_p10, %p791_p4 }
  0x22   : > { %p787_p9 = pneg %p786_p8 }
  0x24   : > { %p794_p0 = pnand %p793_p2, %p787_p9 }
  0x26   : > { %797 = shalt.err (!%p794_p0)
}
  0x27   : > { %709 = dma.hbm_to_vmem [thread:$0]  (!%p998_p5), %s1146_s1, 64, %s143_s4, [#allocation3]  }
  0x28   : > { %s685_s17 = sshll.u32 %s898_s15, 10  ;;  %s157_s30 = scalar_lea.vmem [#allocation7], %s663_s8 }
  0x29   : > { %s1024_s22 = scalar_lea.hbm %s1147_s2, %s685_s17  ;;  %s164_s5 = sshll.u32 %s157_s30, 4  ;;  %s1026_s5 = int_to_ptr.vmem [resolvable:$true] %s164_s5 }
  0x2a   : > { %s1028_s28 = scalar_lea.sflag [#allocation8], %s153_s27  ;;  %s798_s6 = scalar_lea.hbm %s1024_s22, 1024 }
  0x2b   : > { %p799_p6 = scmp.ne.s32.totalorder %s1024_s22, %s798_s6  ;;  %p800_p7 = pneg %p1004_p3 }
  0x2c   : > { %s803_s9 = scalar_lea.hbm %s1147_s2, 2048  ;;  %p804_p9 = scmp.lt.s32.totalorder %s1024_s22, %s1147_s2 }
  0x2d   : > { %p801_p5 = pnand %p800_p7, %p799_p6  ;;  %p805_p4 = scmp.lt.s32.totalorder %s803_s9, %s798_s6 }
  0x2f   : > { %p802_p8 = pneg %p801_p5  ;;  %p806_p10 = por %p805_p4, %p804_p9 }
  0x31   : > { %p807_p2 = pnand %p806_p10, %p802_p8 }
  0x33   : > { %810 = shalt.err (!%p807_p2)
}
  0x34   : > { %s811_s27 = scalar_lea.vmem %s1026_s5, 1024  ;;  %s902_s8 = smov [#allocation7]  }
  0x35   : > { %p812_p0 = scmp.ne.s32.totalorder %s1026_s5, %s811_s27  ;;  %s816_s17 = sshll.u32 %s902_s8, 4  ;;  %s817_s17 = int_to_ptr.vmem [resolvable:$false] %s816_s17 }
  0x36   : > { %s818_s19 = scalar_lea.vmem %s817_s17, 2048  ;;  %p819_p5 = scmp.lt.s32.totalorder %s1026_s5, %s817_s17 }
  0x37   : > { %p814_p1 = pnand %p812_p0, %p800_p7  ;;  %p820_p12 = scmp.lt.s32.totalorder %s818_s19, %s811_s27 }
  0x39   : > { %p815_p6 = pneg %p814_p1  ;;  %p821_p11 = por %p820_p12, %p819_p5 }
  0x3b   : > { %p822_p13 = pnand %p821_p11, %p815_p6 }
  0x3d   : > { %825 = shalt.err (!%p822_p13)
}
  0x3e   : > { %s903_s20 = smov 128   ;;  %s904_s30 = smov 8  }
  0x3f   : > { %713 = dma.hbm_to_vmem [thread:$0]  (!%p1004_p3), %s1024_s22, 1024, %s1026_s5, %s1028_s28, %s903_s20, %s903_s20, %s904_s30  }
  0x40   : > { %p1162_p7 = scmp.ne.s32.totalorder %s1157_s26, 0 }
  0x41   : > { %p1163_p1 = scmp.eq.s32.totalorder (!%p1162_p7), %s948_s16, 0 }
  0x42   : > { %176 = sbr.rel (%p1162_p7) target bundleno = 357 (0x165), region = 32 }
  0x47   : > { %869 = dma.done.wait (%p1163_p1), [#allocation5], 32   ;;  %p1164_p8 = pmov %p1163_p1 }
  0x48   : > { %p1165_p11 = pmov %p1163_p1 }
  0x49   : > { %871 = vsyncadd (%p1164_p8), [#allocation5], 4294967264 }
  0x4a   : > { %873 = dma.done.wait (%p1165_p11), [#allocation3], 64   ;;  %p1166_p12 = pmov %p1163_p1 }
  0x4b   : > { %s1060_s6 = sand.u32 1, %s890_s13   ;;  %p1167_p13 = scmp.ne.s32.totalorder %s1154_s23, 0 }
  0x4c   : > { %875 = vsyncadd (%p1166_p12), [#allocation3], 4294967232  ;;  %s669_s26 = sshll.u32 %s1060_s6, 6  ;;  %s187_s29 = scalar_lea.sflag [#allocation8], %s1060_s6 }
  0x4d   : > { %s1064_s22 = scalar_lea.vmem [#allocation7], %s669_s26 }
  0x4e   : > { %877 = dma.done.wait (%p1167_p13), %s187_s29, 1024  }
  0x4f   : > { %879 = vsyncadd (%p1167_p13), %s187_s29, 4294966272 }
  0x50   : > { %195 = sfence }
  0x51   : > { %s1071_s5 = sshll.u32 %s948_s16, 7  ;;  %v243_v0 = vlaneseq  ;;  %v905_v1 = vmov 0.0   ;;  %v226_v2 = vld [vmem:[#allocation6] ss:$2 sm:$0x3]  ;;  %v302_v44 = vld [vmem:[%s1064_s22] sm:$0xff] }
  0x52   : > { %s215_s28 = sld [smem:[#allocation2 + %s1071_s5]]  ;;  %s216_s4 = sadd.s32 1, %s1071_s5  ;;  %399 = vmatprep.mubr.f32.mxu0 %v905_v1  ;;  %423 = vmatprep.mubr.f32.mxu1 %v905_v1  ;;  %v228_v4 = vld [vmem:[#allocation6 + $0x1] ss:$2 sm:$0x3]  ;;  %vm310_vm0 = vcmask 130048  }
  0x53   : > { %s217_s23 = sld [smem:[#allocation2 + %s216_s4]]  ;;  %s218_s7 = sadd.s32 2, %s1071_s5  ;;  %v244_v3 = vshrl.u32 %v243_v0, 7  ;;  %v306_v45 = vld [vmem:[%s1064_s22 + $0x20] sm:$0xff]  ;;  %v303_v46 = vld [vmem:[%s1064_s22 + $0x8] sm:$0xff]  ;;  %v304_v48 = vld [vmem:[%s1064_s22 + $0x10] sm:$0xff] }
  0x54   : > { %s219_s9 = sld [smem:[#allocation2 + %s218_s7]]  ;;  %s220_s10 = sadd.s32 3, %s1071_s5  ;;  %v307_v47 = vld [vmem:[%s1064_s22 + $0x28] sm:$0xff]  ;;  %v308_v49 = vld [vmem:[%s1064_s22 + $0x30] sm:$0xff]  ;;  %v305_v50 = vld [vmem:[%s1064_s22 + $0x18] sm:$0xff]  ;;  %vm533_vm1 = vcmask 1041409  }
  0x55   : > { %s221_s16 = sld [smem:[#allocation2 + %s220_s10]]  ;;  %s222_s11 = sadd.s32 4, %s1071_s5  ;;  %v245_v9 = vadd.s32 8, %v244_v3  ;;  %v255_v12 = vsub.s32 1, %v244_v3  ;;  %v251_v16 = vsub.s32 0, %v244_v3  ;;  %v246_v21 = vcvt.s32.f32 %v244_v3  ;;  %v309_v51 = vld [vmem:[%s1064_s22 + $0x38] sm:$0xff] }
  0x56   : > { %s223_s27 = sld [smem:[#allocation2 + %s222_s11]]  ;;  %s224_s8 = sadd.s32 5, %s1071_s5  ;;  %vm535_vm2 = vcmask 1045509   ;;  %vm538_vm3 = vcmask 1042434   ;;  %vm540_vm4 = vcmask 1046534   ;;  %vm543_vm5 = vcmask 1043459  }
  0x57   : > { %s225_s17 = sld [smem:[#allocation2 + %s224_s8]]  ;;  %v247_v20 = vcvt.s32.f32 %v245_v9  ;;  %s670_s19 = sshll.u32 %s1060_s6, 3  ;;  %vm545_vm6 = vcmask 1047559  }
  0x58   : > { %v229_v5 = vstv %s215_s28  ;;  %s213_s20 = scalar_lea.vmem [#allocation9], %s670_s19  ;;  %s1108_s22 = scalar_lea.hbm %s1148_s3, %s1071_s5 }
  0x59   : > { %v230_v6 = vmul.f32 %v229_v5, %v226_v2  ;;  %v231_v7 = vstv %s217_s23  ;;  %s564_s30 = sshll.u32 %s213_s20, 4  ;;  %s550_s28 = scalar_lea.sflag [#allocation4], %s1060_s6  ;;  %s565_s30 = int_to_ptr.vmem [resolvable:$true] %s564_s30 }
  0x5a   : > { %v232_v8 = vmul.f32 %v231_v7, %v228_v4  ;;  %v234_v10 = vstv %s219_s9  ;;  %s826_s4 = scalar_lea.vmem %s565_s30, 128  ;;  %p1168_p9 = scmp.ne.s32.totalorder %s1155_s24, 0 }
  0x5b   : > { %v236_v11 = vstv %s221_s16  ;;  %p827_p3 = scmp.ne.s32.totalorder %s565_s30, %s826_s4  ;;  %s906_s23 = smov [#allocation9]  }
  0x5c   : > { %v233_v13 = vadd.f32 %v232_v8, %v230_v6  ;;  %v237_v14 = vmul.f32 %v236_v11, %v226_v2  ;;  %v238_v15 = vstv %s223_s27  ;;  %s830_s7 = sshll.u32 %s906_s23, 4  ;;  %s831_s7 = int_to_ptr.vmem [resolvable:$false] %s830_s7 }
  0x5d   : > { %v239_v17 = vmul.f32 %v238_v15, %v228_v4  ;;  %v241_v19 = vstv %s225_s17  ;;  %p828_p4 = pnand %p827_p3, %p1168_p9  ;;  %s832_s9 = scalar_lea.vmem %s831_s7, 256 }
  0x5e   : > { %v235_v18 = vadd.f32 %v234_v10, %v233_v13  ;;  %p833_p2 = scmp.lt.s32.totalorder %s565_s30, %s831_s7  ;;  %p834_p0 = scmp.lt.s32.totalorder %s832_s9, %s826_s4 }
  0x5f   : > { %v240_v22 = vadd.f32 %v239_v17, %v237_v14  ;;  %p829_p10 = pneg %p828_p4 }
  0x60   : > { %v256_v23 = vrot.slane %v235_v18, %v255_v12  ;;  %v252_v24 = vrot.slane %v235_v18, %v251_v16  ;;  %p835_p6 = por %p834_p0, %p833_p2 }
  0x61   : > { %v242_v25 = vadd.f32 %v241_v19, %v240_v22 }
  0x62   : > { %v262_v26 = vsub.f32 %v247_v20, %v256_v23  ;;  %v261_v27 = vsub.f32 %v247_v20, %v252_v24  ;;  %v260_v28 = vsub.f32 %v246_v21, %v256_v23  ;;  %v259_v29 = vsub.f32 %v246_v21, %v252_v24  ;;  %p836_p5 = pnand %p835_p6, %p829_p10 }
  0x63   : > { %v283_v30 = vrot.slane %v242_v25, %v255_v12  ;;  %v279_v31 = vrot.slane %v242_v25, %v251_v16 }
  0x64   : > { %v266_v32 = vand.u32 2147483647, %v262_v26  ;;  %v265_v33 = vand.u32 2147483647, %v261_v27  ;;  %v264_v34 = vand.u32 2147483647, %v260_v28 }
  0x65   : > { %v263_v35 = vand.u32 2147483647, %v259_v29  ;;  %v286_v52 = vsub.f32 %v246_v21, %v279_v31  ;;  %v288_v53 = vsub.f32 %v247_v20, %v279_v31  ;;  %v287_v54 = vsub.f32 %v246_v21, %v283_v30 }
  0x66   : > { %v270_v36 = vsub.f32 1.0, %v266_v32  ;;  %v269_v37 = vsub.f32 1.0, %v265_v33  ;;  %v268_v38 = vsub.f32 1.0, %v264_v34  ;;  %v289_v55 = vsub.f32 %v247_v20, %v283_v30 }
  0x67   : > { %v267_v39 = vsub.f32 1.0, %v263_v35  ;;  %v290_v56 = vand.u32 2147483647, %v286_v52  ;;  %v292_v57 = vand.u32 2147483647, %v288_v53 }
  0x68   : > { %v274_v40 = vmax.f32 %v270_v36, 0.0  ;;  %v273_v41 = vmax.f32 %v269_v37, 0.0  ;;  %v272_v42 = vmax.f32 %v268_v38, 0.0  ;;  %v291_v58 = vand.u32 2147483647, %v287_v54 }
  0x69   : > { %v271_v43 = vmax.f32 %v267_v39, 0.0  ;;  %v293_v59 = vand.u32 2147483647, %v289_v55  ;;  %v294_v60 = vsub.f32 1.0, %v290_v56  ;;  %v296_v61 = vsub.f32 1.0, %v292_v57 }
  0x6a   : > { %363 = vmatprep.subr.mxu0 %v274_v40  ;;  %687 = vmatprep.subr.mxu1 %v274_v40  ;;  %v295_v62 = vsub.f32 1.0, %v291_v58 }
  0x6b   : > { %364 = vmatpush1.msra.mxu0 %v273_v41  ;;  %689 = vmatpush1.msra.mxu1 %v273_v41  ;;  %v297_v63 = vsub.f32 1.0, %v293_v59  ;;  %v298_v2 = vmax.f32 %v294_v60, 0.0  ;;  %v300_v3 = vmax.f32 %v296_v61, 0.0 }
  0x6c   : > { %365 = vmatprep.subr.mxu0 %v272_v42  ;;  %688 = vmatprep.subr.mxu1 %v272_v42  ;;  %v299_v4 = vmax.f32 %v295_v62, 0.0 }
  0x6d   : > { %366 = vmatpush1.msra.mxu0 %v271_v43  ;;  %690 = vmatpush1.msra.mxu1 %v271_v43  ;;  %v301_v8 = vmax.f32 %v297_v63, 0.0 }
  0x6e   : > { %672 = vmatmul.mubr.msk.f32.vlgmr.msra.gmra.mxu0 %vm310_vm0, %v302_v44  ;;  %676 = vmatmul.mubr.msk.f32.vlgmr.msra.gmra.mxu1 %vm310_vm0, %v306_v45 }
  0x6f   : > { %405 = vmatprep.mubr.f32.mxu0 %v905_v1  ;;  %429 = vmatprep.mubr.f32.mxu1 %v905_v1 }
  0x72   : > { %673 = vmatmul.mubr.msk.f32.gmra.mxu0 %vm310_vm0, %v303_v46  ;;  %677 = vmatmul.mubr.msk.f32.gmra.mxu1 %vm310_vm0, %v307_v47 }
  0x73   : > { %411 = vmatprep.mubr.f32.mxu0 %v905_v1  ;;  %435 = vmatprep.mubr.f32.mxu1 %v905_v1 }
  0x76   : > { %674 = vmatmul.mubr.msk.f32.gmra.mxu0 %vm310_vm0, %v304_v48  ;;  %678 = vmatmul.mubr.msk.f32.gmra.mxu1 %vm310_vm0, %v308_v49 }
  0x77   : > { %417 = vmatprep.mubr.f32.mxu0 %v905_v1  ;;  %441 = vmatprep.mubr.f32.mxu1 %v905_v1 }
  0x7a   : > { %675 = vmatmul.mubr.msk.f32.gmra.mxu0 %vm310_vm0, %v305_v50  ;;  %679 = vmatmul.mubr.msk.f32.gmra.mxu1 %vm310_vm0, %v309_v51 }
 0x12e   : > { %v401_v0 = vpop.f32.mrf.mxu0  ;;  %v425_v1 = vpop.f32.mrf.mxu1 }
 0x12f   : > { %v456_v7 = vmul.f32 %v425_v1, %v298_v2  ;;  %v448_v11 = vmul.f32 %v401_v0, %v298_v2 }
 0x130   : > { %v403_v5 = vpop.f32.mrf.mxu0  ;;  %v427_v6 = vpop.f32.mrf.mxu1 }
 0x131   : > { %v449_v14 = vmul.f32 %v403_v5, %v299_v4  ;;  %v457_v15 = vmul.f32 %v427_v6, %v299_v4 }
 0x132   : > { %v407_v9 = vpop.f32.mrf.mxu0  ;;  %v431_v10 = vpop.f32.mrf.mxu1 }
 0x133   : > { %v450_v12 = vmul.f32 %v407_v9, %v300_v3  ;;  %v458_v13 = vmul.f32 %v431_v10, %v300_v3 }
 0x134   : > { %v409_v16 = vpop.f32.mrf.mxu0  ;;  %v433_v17 = vpop.f32.mrf.mxu1 }
 0x135   : > { %v464_v18 = vadd.f32 %v450_v12, %v448_v11  ;;  %v492_v19 = vadd.f32 %v458_v13, %v456_v7  ;;  %v451_v20 = vmul.f32 %v409_v16, %v301_v8  ;;  %v459_v21 = vmul.f32 %v433_v17, %v301_v8 }
 0x136   : > { %v413_v22 = vpop.f32.mrf.mxu0  ;;  %v437_v23 = vpop.f32.mrf.mxu1 }
 0x137   : > { %v465_v24 = vrot.slane %v464_v18, 4  ;;  %v493_v25 = vrot.slane %v492_v19, 4  ;;  %v471_v26 = vadd.f32 %v451_v20, %v449_v14  ;;  %v499_v27 = vadd.f32 %v459_v21, %v457_v15 }
 0x138   : > { %v415_v28 = vpop.f32.mrf.mxu0  ;;  %v439_v29 = vpop.f32.mrf.mxu1  ;;  %v452_v34 = vmul.f32 %v413_v22, %v298_v2  ;;  %v460_v35 = vmul.f32 %v437_v23, %v298_v2 }
 0x139   : > { %v466_v30 = vadd.f32 %v465_v24, %v464_v18  ;;  %v494_v31 = vadd.f32 %v493_v25, %v492_v19  ;;  %v472_v32 = vrot.slane %v471_v26, 4  ;;  %v500_v33 = vrot.slane %v499_v27, 4 }
 0x13a   : > { %v419_v36 = vpop.f32.mrf.mxu0  ;;  %v443_v37 = vpop.f32.mrf.mxu1  ;;  %v453_v42 = vmul.f32 %v415_v28, %v299_v4  ;;  %v461_v43 = vmul.f32 %v439_v29, %v299_v4 }
 0x13b   : > { %v467_v38 = vrot.slane %v466_v30, 2  ;;  %v495_v39 = vrot.slane %v494_v31, 2  ;;  %v473_v40 = vadd.f32 %v472_v32, %v471_v26  ;;  %v501_v41 = vadd.f32 %v500_v33, %v499_v27 }
 0x13c   : > { %v454_v44 = vmul.f32 %v419_v36, %v300_v3  ;;  %v462_v45 = vmul.f32 %v443_v37, %v300_v3  ;;  %v421_v46 = vpop.f32.mrf.mxu0  ;;  %v445_v47 = vpop.f32.mrf.mxu1 }
 0x13d   : > { %v468_v48 = vadd.f32 %v467_v38, %v466_v30  ;;  %v496_v49 = vadd.f32 %v495_v39, %v494_v31  ;;  %v474_v50 = vrot.slane %v473_v40, 2  ;;  %v502_v51 = vrot.slane %v501_v41, 2 }
 0x13e   : > { %v478_v52 = vadd.f32 %v454_v44, %v452_v34  ;;  %v506_v53 = vadd.f32 %v462_v45, %v460_v35  ;;  %v455_v54 = vmul.f32 %v421_v46, %v301_v8  ;;  %v463_v55 = vmul.f32 %v445_v47, %v301_v8 }
 0x13f   : > { %v469_v56 = vrot.slane %v468_v48, 1  ;;  %v497_v57 = vrot.slane %v496_v49, 1  ;;  %v475_v58 = vadd.f32 %v474_v50, %v473_v40  ;;  %v503_v59 = vadd.f32 %v502_v51, %v501_v41 }
 0x140   : > { %v479_v60 = vrot.slane %v478_v52, 4  ;;  %v507_v61 = vrot.slane %v506_v53, 4  ;;  %v485_v62 = vadd.f32 %v455_v54, %v453_v42  ;;  %v513_v63 = vadd.f32 %v463_v55, %v461_v43 }
 0x141   : > { %v476_v0 = vrot.slane %v475_v58, 1  ;;  %v504_v1 = vrot.slane %v503_v59, 1  ;;  %v470_v6 = vadd.f32 %v469_v56, %v468_v48  ;;  %v498_v7 = vadd.f32 %v497_v57, %v496_v49 }
 0x142   : > { %v480_v2 = vadd.f32 %v479_v60, %v478_v52  ;;  %v508_v3 = vadd.f32 %v507_v61, %v506_v53  ;;  %v486_v4 = vrot.slane %v485_v62, 4  ;;  %v514_v5 = vrot.slane %v513_v63, 4 }
 0x143   : > { %v477_v9 = vadd.f32 %v476_v0, %v475_v58  ;;  %v505_v10 = vadd.f32 %v504_v1, %v503_v59 }
 0x144   : > { %v481_v11 = vrot.slane %v480_v2, 2  ;;  %v509_v8 = vrot.slane %v508_v3, 2  ;;  %v487_v12 = vadd.f32 %v486_v4, %v485_v62  ;;  %v515_v13 = vadd.f32 %v514_v5, %v513_v63 }
 0x145   : > { %v528_v14 = vcombine.low %v470_v6, %v477_v9  ;;  %v530_v15 = vcombine.low %v498_v7, %v505_v10 }
 0x146   : > { %v482_v16 = vadd.f32 %v481_v11, %v480_v2  ;;  %v510_v17 = vadd.f32 %v509_v8, %v508_v3  ;;  %v488_v18 = vrot.slane %v487_v12, 2  ;;  %v516_v19 = vrot.slane %v515_v13, 2 }
 0x147   : > { %v537_v33 = vrot.slane %v530_v15, 6 }
 0x148   : > { %v483_v20 = vrot.slane %v482_v16, 1  ;;  %v511_v21 = vrot.slane %v510_v17, 1  ;;  %v489_v22 = vadd.f32 %v488_v18, %v487_v12  ;;  %v517_v23 = vadd.f32 %v516_v19, %v515_v13 }
 0x14a   : > { %v490_v24 = vrot.slane %v489_v22, 1  ;;  %v518_v25 = vrot.slane %v517_v23, 1  ;;  %v484_v26 = vadd.f32 %v483_v20, %v482_v16  ;;  %v512_v27 = vadd.f32 %v511_v21, %v510_v17 }
 0x14c   : > { %v491_v28 = vadd.f32 %v490_v24, %v489_v22  ;;  %v519_v29 = vadd.f32 %v518_v25, %v517_v23 }
 0x14e   : > { %v529_v30 = vcombine.low %v484_v26, %v491_v28  ;;  %v531_v31 = vcombine.low %v512_v27, %v519_v29 }
 0x150   : > { %v532_v32 = vrot.slane %v529_v30, 7  ;;  %v542_v37 = vrot.slane %v531_v31, 5 }
 0x152   : > { %v534_v34 = vsel %vm533_vm1, %v532_v32, %v528_v14 }
 0x153   : > { %v536_v35 = vsel %vm535_vm2, %v532_v32, %v534_v34 }
 0x154   : > { %v539_v36 = vsel %vm538_vm3, %v537_v33, %v536_v35 }
 0x155   : > { %v541_v38 = vsel %vm540_vm4, %v537_v33, %v539_v36 }
 0x156   : > { %v544_v39 = vsel %vm543_vm5, %v542_v37, %v541_v38 }
 0x157   : > { %v546_v40 = vsel %vm545_vm6, %v542_v37, %v544_v39 }
 0x158   : > { %548 = vst [vmem:[%s213_s20] sm:$0xff] %v546_v40 }
 0x159   : > { %839 = shalt.err (!%p836_p5)
}
 0x15a   : > { %s840_s5 = scalar_lea.hbm %s1108_s22, 128  ;;  %s844_s16 = scalar_lea.hbm %s1148_s3, 256 }
 0x15b   : > { %p841_p7 = scmp.ne.s32.totalorder %s1108_s22, %s840_s5  ;;  %p845_p11 = scmp.lt.s32.totalorder %s1108_s22, %s1148_s3 }
 0x15c   : > { %p846_p12 = scmp.lt.s32.totalorder %s844_s16, %s840_s5 }
 0x15d   : > { %p842_p1 = pnand %p841_p7, %p1168_p9 }
 0x15e   : > { %p847_p13 = por %p846_p12, %p845_p11 }
 0x15f   : > { %p843_p8 = pneg %p842_p1 }
 0x161   : > { %p848_p3 = pnand %p847_p13, %p843_p8 }
 0x163   : > { %851 = shalt.err (!%p848_p3)
}
 0x164   : > { %701 = dma.vmem_to_hbm [thread:$0]  (%p1168_p9), %s565_s30, 128, %s1108_s22, %s550_s28  }
 0x165 PF: > { %s576_s8 = sand.u32 1, %s886_s12   ;;  %p1169_p4 = scmp.ne.s32.totalorder %s1156_s25, 0 }
 0x166   : > { %p1170_p10 = scmp.ge.s32.totalorder %s898_s15, 2  ;;  %s577_s17 = scalar_lea.sflag [#allocation4], %s576_s8 }
 0x168   : > { %p715_p2 = pnand %p1170_p10, %p1169_p4 }
 0x16a   : > { %p716_p0 = pneg %p715_p2 }
 0x16c   : > { %881 = dma.done.wait (%p716_p0), %s577_s17, 128  }
 0x16d   : > { %883 = vsyncadd (%p716_p0), %s577_s17, 4294967168  ;;  %p18_p6 = scmp.ge.s32.totalorder %s952_s18, 4   ;;  %s1171_s12 = smov %s890_s13 }
 0x16e   : > { %s1172_s13 = smov %s894_s14  ;;  %s1173_s14 = smov %s964_s21 }
 0x16f   : > { %s1174_s15 = smov %s952_s18  ;;  %20 = sbr.rel (!%p18_p6) target bundleno = 7 (0x7), region = 88 }
 0x174   :  { %582 = vsyncpa [#allocation3], 1 }
 0x175   :  { %584 = vsyncpa [#allocation3 + $0x1], 1 }
 0x176   :  { %585 = vsyncpa [#allocation8], 1 }
 0x177   :  { %587 = vsyncpa [#allocation8 + $0x1], 1 }
 0x178   :  { %588 = vsyncpa [#allocation4], 1 }
 0x179   :  { %590 = vsyncpa [#allocation4 + $0x1], 1 }
 0x17a   :  { %591 = vsyncpa [#allocation5], 1 }
 0x17b   :  { %593 = vsyncpa [#allocation5 + $0x1], 1 }

</bundles_post_ra>
